<compile_context>
chip_gen: v6e
topology: v6e:2x2x1
jax: 0.10.0
libtpu: 0.0.40
codegen_flags: <defaults>
</compile_context>

<pallas_src>
import functools

import jax
import jax.numpy as jnp
from jax import lax
from jax.experimental import pallas as pl
from jax.experimental.pallas import tpu as pltpu


# ----------------------------------------------------------------------------
# Helpers
# ----------------------------------------------------------------------------
def _round_up(x, m):
    return (x + m - 1) // m * m


def _vmem_limit_bytes():
    # Generation-aware scoped-VMEM limit: ~75% of physical VMEM, capped.
    # v5e/v6e (128 MiB) -> 96 MiB; v7x (64 MiB per TC) -> 48 MiB.
    try:
        cap = int(pltpu.get_tpu_info().vmem_capacity_bytes)
    except Exception:
        cap = 64 << 20  # conservative fallback (v7x-sized)
    return min((cap * 3) // 4, 96 << 20)


_VMEM_LIMIT = _vmem_limit_bytes()


def _probe_buffered_support():
    """One-time check that pipeline_mode=pl.Buffered(1) lowers on this build.
    Pure perf knob (single-buffer grid-invariant weights); falls back to the
    default double-buffering if unsupported."""
    try:
        spec = pl.BlockSpec((8, 128), lambda i: (0, 0),
                            pipeline_mode=pl.Buffered(1))

        def _copy(x_ref, o_ref):
            o_ref[...] = x_ref[...]

        out = pl.pallas_call(
            _copy,
            out_shape=jax.ShapeDtypeStruct((8, 128), jnp.float32),
            grid_spec=pltpu.PrefetchScalarGridSpec(
                num_scalar_prefetch=0, grid=(1,),
                in_specs=[spec],
                out_specs=pl.BlockSpec((8, 128), lambda i: (0, 0))),
        )(jnp.zeros((8, 128), jnp.float32))
        jax.block_until_ready(out)
        return True
    except Exception:
        return False


_USE_BUFFERED = _probe_buffered_support()


def _resident(shape, index_map):
    """Grid-invariant operand (weights / biases): single VMEM buffer."""
    if _USE_BUFFERED:
        return pl.BlockSpec(shape, index_map, pipeline_mode=pl.Buffered(1))
    return pl.BlockSpec(shape, index_map)


def _pick_tiles(n_real):
    """Pick (tile_q, tile_kv, n_pad): tile_kv streams K/V, tile_q (a multiple
    of tile_kv, <=512 rows) maximizes K/V reuse; keep >=2 qi blocks when
    possible so v7x can shard the 'parallel' axis across both TensorCores."""
    n8 = _round_up(max(n_real, 8), 8)
    tile_kv = min(256, n8)
    n_pad = _round_up(n8, tile_kv)
    kv_blocks = n_pad // tile_kv
    q_blocks = max(1, min(512 // tile_kv, kv_blocks))
    if kv_blocks >= 2 and q_blocks == kv_blocks:
        q_blocks = kv_blocks // 2          # keep >=2 qi tiles for dual-TC
    while kv_blocks % q_blocks:
        q_blocks -= 1                      # tile_q must divide n_pad
    tile_q = q_blocks * tile_kv
    return tile_q, tile_kv, n_pad


# ----------------------------------------------------------------------------
# Kernels
# ----------------------------------------------------------------------------
def _kv_proj_kernel(x_ref, w_ref, b_ref, o_ref):
    """One wide MXU matmul: [K|V] = x @ [Wk|Wv] + [bk|bv]  (bf16 out)."""
    kv = jnp.dot(x_ref[...], w_ref[...], preferred_element_type=jnp.float32)
    o_ref[...] = (kv + b_ref[...]).astype(o_ref.dtype)


def _flash_block_kernel(x_ref, k_ref, v_ref, wq_ref, bq_ref, wr_ref, br_ref,
                        wo_ref, bo_ref, o_ref, q_sc, m_sc, l_sc, acc_sc,
                        *, scale, n_real, tile_kv):
    """KV-tiled online-softmax attention.

    ki == 0    : project Q from the resident x row tile, reset m/l/acc.
    every ki   : scores (bf16 MXU, contracting last axes -> no explicit k.T),
                 online-softmax update in f32, p@V accumulation (bf16 MXU).
    ki == last : fused output projection + linear residual + ReLU epilogue.
    """
    ki = pl.program_id(1)

    @pl.when(ki == 0)
    def _():
        q = (jnp.dot(x_ref[...], wq_ref[...],
                     preferred_element_type=jnp.float32) + bq_ref[...])
        q_sc[...] = q.astype(q_sc.dtype)
        m_sc[...] = jnp.full_like(m_sc, -1e30)
        l_sc[...] = jnp.zeros_like(l_sc)
        acc_sc[...] = jnp.zeros_like(acc_sc)

    # Contract the last axes of Q and K -> no k.T materialization needed.
    s = lax.dot_general(q_sc[...], k_ref[...], (((1,), (1,)), ((), ())),
                        preferred_element_type=jnp.float32) * scale  # [TQ,TK]

    if n_real is not None:
        # Padded keys only exist in the final KV tile; a (1, TK) iota
        # broadcast keeps the mask cheap.  exp(-1e30 - m) underflows to 0, so
        # a single select on the scores is enough (no second where on p).
        key_idx = ki * tile_kv + lax.broadcasted_iota(jnp.int32, (1, tile_kv), 1)
        s = jnp.where(key_idx >= n_real, -1e30, s)

    m_new = jnp.maximum(m_sc[...], jnp.max(s, axis=-1, keepdims=True))
    a = jnp.exp(m_sc[...] - m_new)
    p = jnp.exp(s - m_new)
    l_sc[...] = a * l_sc[...] + jnp.sum(p, axis=-1, keepdims=True)
    acc_sc[...] = a * acc_sc[...] + jnp.dot(
        p.astype(v_ref.dtype), v_ref[...], preferred_element_type=jnp.float32)
    m_sc[...] = m_new

    @pl.when(ki == pl.num_programs(1) - 1)
    def _():
        att = acc_sc[...] * pl.reciprocal(l_sc[...], approx=True)
        out = (jnp.dot(att.astype(wo_ref.dtype), wo_ref[...],
                       preferred_element_type=jnp.float32) + bo_ref[...])
        res = (jnp.dot(x_ref[...], wr_ref[...],
                       preferred_element_type=jnp.float32) + br_ref[...])
        o_ref[...] = jnp.maximum(out + res, 0.0).astype(o_ref.dtype)


def _mlp_head_kernel(x_ref, w1_ref, b1_ref, w2_ref, b2_ref, w3_ref, b3_ref,
                     o_ref):
    """fc1 -> relu -> fc2 -> relu -> fc3 fused on a resident row tile."""
    h = jnp.dot(x_ref[...], w1_ref[...], preferred_element_type=jnp.float32)
    h = jnp.maximum(h + b1_ref[...], 0.0).astype(x_ref.dtype)
    h = jnp.dot(h, w2_ref[...], preferred_element_type=jnp.float32)
    h = jnp.maximum(h + b2_ref[...], 0.0).astype(x_ref.dtype)
    o_ref[...] = (jnp.dot(h, w3_ref[...], preferred_element_type=jnp.float32)
                  + b3_ref[...])


# ----------------------------------------------------------------------------
# Pallas wrappers
# ----------------------------------------------------------------------------
def _kv_projection(x_pad, wkv, bkv, *, tile_q):
    n_pad, d_in = x_pad.shape
    d2 = wkv.shape[1]
    return pl.pallas_call(
        _kv_proj_kernel,
        out_shape=jax.ShapeDtypeStruct((n_pad, d2), jnp.bfloat16),
        grid_spec=pltpu.PrefetchScalarGridSpec(
            num_scalar_prefetch=0,
            grid=(n_pad // tile_q,),
            in_specs=[
                pl.BlockSpec((tile_q, d_in), lambda i: (i, 0)),
                _resident((d_in, d2), lambda i: (0, 0)),
                _resident((1, d2), lambda i: (0, 0)),
            ],
            out_specs=pl.BlockSpec((tile_q, d2), lambda i: (i, 0)),
        ),
        compiler_params=pltpu.CompilerParams(
            dimension_semantics=("parallel",),
            vmem_limit_bytes=_VMEM_LIMIT),
    )(x_pad, wkv, bkv)


def attention_block_forward(x_pad, n_real, stage, *, tile_q, tile_kv):
    """One AttentionNN stage: relu(Attention(x) + residual_linear(x)) (bf16)."""
    n_pad, d_in = x_pad.shape
    d_out = stage["wq"].shape[1]

    kv = _kv_projection(x_pad, stage["wkv"], stage["bkv"], tile_q=tile_q)

    masked = (n_pad != n_real)
    kernel = functools.partial(
        _flash_block_kernel,
        scale=1.0 / (float(d_out) ** 0.5),
        n_real=(n_real if masked else None),
        tile_kv=tile_kv,
    )

    return pl.pallas_call(
        kernel,
        out_shape=jax.ShapeDtypeStruct((n_pad, d_out), jnp.bfloat16),
        grid_spec=pltpu.PrefetchScalarGridSpec(
            num_scalar_prefetch=0,
            grid=(n_pad // tile_q, n_pad // tile_kv),
            in_specs=[
                pl.BlockSpec((tile_q, d_in), lambda qi, ki: (qi, 0)),    # x
                pl.BlockSpec((tile_kv, d_out), lambda qi, ki: (ki, 0)),  # K
                pl.BlockSpec((tile_kv, d_out), lambda qi, ki: (ki, 1)),  # V
                _resident((d_in, d_out), lambda qi, ki: (0, 0)),         # Wq
                _resident((1, d_out), lambda qi, ki: (0, 0)),            # bq
                _resident((d_in, d_out), lambda qi, ki: (0, 0)),         # Wres
                _resident((1, d_out), lambda qi, ki: (0, 0)),            # bres
                _resident((d_out, d_out), lambda qi, ki: (0, 0)),        # Wo
                _resident((1, d_out), lambda qi, ki: (0, 0)),            # bo
            ],
            out_specs=pl.BlockSpec((tile_q, d_out), lambda qi, ki: (qi, 0)),
            scratch_shapes=[
                pltpu.VMEM((tile_q, d_out), jnp.bfloat16),  # Q (bf16 MXU operand)
                pltpu.VMEM((tile_q, 1), jnp.float32),       # running max m
                pltpu.VMEM((tile_q, 1), jnp.float32),       # running sum l
                pltpu.VMEM((tile_q, d_out), jnp.float32),   # f32 accumulator
            ],
        ),
        compiler_params=pltpu.CompilerParams(
            dimension_semantics=("parallel", "arbitrary"),
            vmem_limit_bytes=_VMEM_LIMIT),
    )(x_pad, kv, kv, stage["wq"], stage["bq"], stage["wr"], stage["br"],
      stage["wo"], stage["bo"])


def mlp_head(x_pad, mlp, *, tile_q):
    n_pad, d_in = x_pad.shape
    w1, b1 = mlp["w1"], mlp["b1"]
    w2, b2 = mlp["w2"], mlp["b2"]
    w3, b3 = mlp["w3"], mlp["b3"]
    h1, h2, c_pad = w1.shape[1], w2.shape[1], w3.shape[1]
    return pl.pallas_call(
        _mlp_head_kernel,
        out_shape=jax.ShapeDtypeStruct((n_pad, c_pad), jnp.float32),
        grid_spec=pltpu.PrefetchScalarGridSpec(
            num_scalar_prefetch=0,
            grid=(n_pad // tile_q,),
            in_specs=[
                pl.BlockSpec((tile_q, d_in), lambda i: (i, 0)),
                _resident((d_in, h1), lambda i: (0, 0)),
                _resident((1, h1), lambda i: (0, 0)),
                _resident((h1, h2), lambda i: (0, 0)),
                _resident((1, h2), lambda i: (0, 0)),
                _resident((h2, c_pad), lambda i: (0, 0)),
                _resident((1, c_pad), lambda i: (0, 0)),
            ],
            out_specs=pl.BlockSpec((tile_q, c_pad), lambda i: (i, 0)),
        ),
        compiler_params=pltpu.CompilerParams(
            dimension_semantics=("parallel",),
            vmem_limit_bytes=_VMEM_LIMIT),
    )(x_pad, w1, b1, w2, b2, w3, b3)


# ----------------------------------------------------------------------------
# Parameter construction (deterministic, synthetic) + one-time packing
# ----------------------------------------------------------------------------
def _make_linear_params(key, d_in, d_out):
    kw, kb = jax.random.split(key)
    bound = 1.0 / jnp.sqrt(jnp.float32(d_in))
    w = jax.random.uniform(kw, (d_in, d_out), jnp.float32, -bound, bound)
    b = jax.random.uniform(kb, (1, d_out), jnp.float32, -bound, bound)
    return w, b


def _make_attention_params(key, d_in, d_out):
    keys = jax.random.split(key, 4)
    wq, bq = _make_linear_params(keys[0], d_in, d_out)
    wk, bk = _make_linear_params(keys[1], d_in, d_out)
    wv, bv = _make_linear_params(keys[2], d_in, d_out)
    wo, bo = _make_linear_params(keys[3], d_out, d_out)
    return dict(wq=wq, bq=bq, wk=wk, bk=bk, wv=wv, bv=bv, wo=wo, bo=bo)


def make_attention_nn_params(key, num_node_features, num_classes):
    keys = jax.random.split(key, 9)
    p = {}
    p["att1"] = _make_attention_params(keys[0], num_node_features, 1024)
    p["att2"] = _make_attention_params(keys[1], 1024, 512)
    p["att3"] = _make_attention_params(keys[2], 512, 512)
    p["res1"] = _make_linear_params(keys[3], num_node_features, 1024)
    p["res2"] = _make_linear_params(keys[4], 1024, 512)
    p["res3"] = _make_linear_params(keys[5], 512, 512)
    p["fc1"] = _make_linear_params(keys[6], 512, 256)
    p["fc2"] = _make_linear_params(keys[7], 256, 128)
    p["fc3"] = _make_linear_params(keys[8], 128, num_classes)
    return p


def prepare_params(params):
    """One-time packing for the Pallas forward (hoisted out of the per-call
    path): bf16 MXU weights, K|V concatenation, lane-padded fc3."""
    bf = jnp.bfloat16
    prepared = {}
    for i in (1, 2, 3):
        a = params[f"att{i}"]
        wr, br = params[f"res{i}"]
        prepared[f"stage{i}"] = dict(
            wq=a["wq"].astype(bf), bq=a["bq"],
            wkv=jnp.concatenate([a["wk"], a["wv"]], axis=1).astype(bf),
            bkv=jnp.concatenate([a["bk"], a["bv"]], axis=1),
            wo=a["wo"].astype(bf), bo=a["bo"],
            wr=wr.astype(bf), br=br,
        )
    w1, b1 = params["fc1"]
    w2, b2 = params["fc2"]
    w3, b3 = params["fc3"]
    c = w3.shape[1]
    c_pad = _round_up(c, 128)              # lane-dense fc3 output; slice outside
    if c_pad != c:
        w3 = jnp.pad(w3, ((0, 0), (0, c_pad - c)))
        b3 = jnp.pad(b3, ((0, 0), (0, c_pad - c)))
    prepared["mlp"] = dict(w1=w1.astype(bf), b1=b1, w2=w2.astype(bf), b2=b2,
                           w3=w3.astype(bf), b3=b3)
    prepared["num_classes"] = c
    return prepared


# ----------------------------------------------------------------------------
# Full forward pass (eval mode: dropout = identity)
# ----------------------------------------------------------------------------
def attention_nn_forward(prepared, x):
    n_real = x.shape[0]
    num_classes = prepared["num_classes"]

    tile_q, tile_kv, n_pad = _pick_tiles(n_real)
    x = x.astype(jnp.bfloat16)
    if n_pad != n_real:
        x = jnp.pad(x, ((0, n_pad - n_real), (0, 0)))

    x = attention_block_forward(x, n_real, prepared["stage1"],
                                tile_q=tile_q, tile_kv=tile_kv)
    x = attention_block_forward(x, n_real, prepared["stage2"],
                                tile_q=tile_q, tile_kv=tile_kv)
    x = attention_block_forward(x, n_real, prepared["stage3"],
                                tile_q=tile_q, tile_kv=tile_kv)
    x = mlp_head(x, prepared["mlp"], tile_q=tile_q)

    return x[:n_real, :num_classes]        # drop row / class padding (plain XLA)


# ----------------------------------------------------------------------------
# Pure-JAX f32 reference (sanity check)
# ----------------------------------------------------------------------------
def _ref_forward(params, x):
    def att_ref(x, a, res):
        q = x @ a["wq"] + a["bq"]
        k = x @ a["wk"] + a["bk"]
        v = x @ a["wv"] + a["bv"]
        s = (q @ k.T) / jnp.sqrt(jnp.float32(q.shape[-1]))
        w = jax.nn.softmax(s, axis=-1)
        o = (w @ v) @ a["wo"] + a["bo"]
        wr, br = res
        return jax.nn.relu(o + x @ wr + br)

    x = att_ref(x, params["att1"], params["res1"])
    x = att_ref(x, params["att2"], params["res2"])
    x = att_ref(x, params["att3"], params["res3"])
    x = jax.nn.relu(x @ params["fc1"][0] + params["fc1"][1])
    x = jax.nn.relu(x @ params["fc2"][0] + params["fc2"][1])
    return x @ params["fc3"][0] + params["fc3"][1]


# ----------------------------------------------------------------------------
if __name__ == "__main__":
    num_node_features = 16
    num_classes = 4
    num_nodes = 8

    key = jax.random.PRNGKey(0)
    k_params, k_x = jax.random.split(key)

    params = make_attention_nn_params(k_params, num_node_features, num_classes)
    prepared = prepare_params(params)
    x = jax.random.normal(k_x, (num_nodes, num_node_features), jnp.float32)

    out = attention_nn_forward(prepared, x)
    out = jax.block_until_ready(out)

    ref = _ref_forward(params, x)
    assert out.shape == (num_nodes, num_classes)
    # bf16 MXU operands -> compare against the pure-f32 reference at bf16-level
    # tolerance (softmax stats and accumulations are kept in f32).
    assert jnp.allclose(out, ref, atol=5e-2, rtol=5e-2), "mismatch vs reference"

    print("KERNEL_OK")
</pallas_src>

<mosaic_0001>
module attributes {stable_mosaic.version = 11 : i64} {
  func.func @_copy(%arg0: i32, %arg1: memref<8x128xf32, #tpu.memory_space<vmem>>, %arg2: memref<8x128xf32, #tpu.memory_space<vmem>>) attributes {dimension_semantics = [#tpu.dimension_semantics<arbitrary>], iteration_bounds = array<i64: 1>, scalar_prefetch = 0 : i64, scratch_operands = 0 : i64, tpu.core_type = #tpu.core_type<tc>, window_params = [{pipeline_mode = #tpu.pipeline_mode<synchronous>, transform_indices = @transform_0, window_bounds = array<i64: 8, 128>}, {pipeline_mode = #tpu.pipeline_mode<synchronous>, transform_indices = @transform_1, window_bounds = array<i64: 8, 128>}]} {
    %c0 = arith.constant 0 : index
    %c0_0 = arith.constant 0 : index
    %0 = vector.load %arg1[%c0, %c0_0] : memref<8x128xf32, #tpu.memory_space<vmem>>, vector<8x128xf32>
    %c0_1 = arith.constant 0 : index
    %c0_2 = arith.constant 0 : index
    %1 = vector.load %arg2[%c0_1, %c0_2] : memref<8x128xf32, #tpu.memory_space<vmem>>, vector<8x128xf32>
    tpu.vector_store %arg2[%c0_1, %c0_2], %0 {strides = array<i32>} : memref<8x128xf32, #tpu.memory_space<vmem>>, vector<8x128xf32>,
    return
  }
  func.func @transform_0(%arg0: i32) -> (i32, i32) {
    %c0_i32 = arith.constant 0 : i32
    %c0_i32_0 = arith.constant 0 : i32
    %c0_i32_1 = arith.constant 0 : i32
    return %c0_i32, %c0_i32_0 : i32, i32
  }
  func.func @transform_1(%arg0: i32) -> (i32, i32) {
    %c0_i32 = arith.constant 0 : i32
    %c0_i32_0 = arith.constant 0 : i32
    %c0_i32_1 = arith.constant 0 : i32
    return %c0_i32, %c0_i32_0 : i32, i32
  }
}

module attributes {stable_mosaic.version = 11 : i64} {
  func.func @_kv_proj_kernel(%arg0: i32, %arg1: memref<8x16xbf16, #tpu.memory_space<vmem>>, %arg2: memref<16x2048xbf16, #tpu.memory_space<vmem>>, %arg3: memref<1x2048xf32, #tpu.memory_space<vmem>>, %arg4: memref<8x2048xbf16, #tpu.memory_space<vmem>>) attributes {dimension_semantics = [#tpu.dimension_semantics<parallel>], iteration_bounds = array<i64: 1>, scalar_prefetch = 0 : i64, scratch_operands = 0 : i64, tpu.core_type = #tpu.core_type<tc>, window_params = [{transform_indices = @transform_0, window_bounds = array<i64: 8, 16>}, {pipeline_mode = #tpu.pipeline_mode<synchronous>, transform_indices = @transform_1, window_bounds = array<i64: 16, 2048>}, {pipeline_mode = #tpu.pipeline_mode<synchronous>, transform_indices = @transform_2, window_bounds = array<i64: 1, 2048>}, {transform_indices = @transform_3, window_bounds = array<i64: 8, 2048>}]} {
    %c0 = arith.constant 0 : index
    %c0_0 = arith.constant 0 : index
    %0 = vector.load %arg1[%c0, %c0_0] : memref<8x16xbf16, #tpu.memory_space<vmem>>, vector<8x16xbf16>
    %c0_1 = arith.constant 0 : index
    %c0_2 = arith.constant 0 : index
    %1 = vector.load %arg2[%c0_1, %c0_2] : memref<16x2048xbf16, #tpu.memory_space<vmem>>, vector<16x2048xbf16>
    %cst = arith.constant dense<0.000000e+00> : vector<8x2048xf32>
    %2 = tpu.matmul %0, %1, %cst {dimension_numbers = #tpu.dot_dimension_numbers<[1], [0], [0], [1], [0, 0, 1, 1], [], []>} : vector<8x16xbf16>, vector<16x2048xbf16>, vector<8x2048xf32> -> vector<8x2048xf32>
    %c0_3 = arith.constant 0 : index
    %c0_4 = arith.constant 0 : index
    %3 = vector.load %arg3[%c0_3, %c0_4] : memref<1x2048xf32, #tpu.memory_space<vmem>>, vector<1x2048xf32>
    %4 = vector.broadcast %3 : vector<1x2048xf32> to vector<8x2048xf32>
    %5 = arith.addf %2, %4 : vector<8x2048xf32>
    %6 = arith.truncf %5 : vector<8x2048xf32> to vector<8x2048xbf16>
    %c0_5 = arith.constant 0 : index
    %c0_6 = arith.constant 0 : index
    %7 = vector.load %arg4[%c0_5, %c0_6] : memref<8x2048xbf16, #tpu.memory_space<vmem>>, vector<8x2048xbf16>
    tpu.vector_store %arg4[%c0_5, %c0_6], %6 {strides = array<i32>} : memref<8x2048xbf16, #tpu.memory_space<vmem>>, vector<8x2048xbf16>,
    return
  }
  func.func @transform_0(%arg0: i32) -> (i32, i32) {
    %c0_i32 = arith.constant 0 : i32
    %c0_i32_0 = arith.constant 0 : i32
    return %arg0, %c0_i32 : i32, i32
  }
  func.func @transform_1(%arg0: i32) -> (i32, i32) {
    %c0_i32 = arith.constant 0 : i32
    %c0_i32_0 = arith.constant 0 : i32
    %c0_i32_1 = arith.constant 0 : i32
    return %c0_i32, %c0_i32_0 : i32, i32
  }
  func.func @transform_2(%arg0: i32) -> (i32, i32) {
    %c0_i32 = arith.constant 0 : i32
    %c0_i32_0 = arith.constant 0 : i32
    %c0_i32_1 = arith.constant 0 : i32
    return %c0_i32, %c0_i32_0 : i32, i32
  }
  func.func @transform_3(%arg0: i32) -> (i32, i32) {
    %c0_i32 = arith.constant 0 : i32
    %c0_i32_0 = arith.constant 0 : i32
    return %arg0, %c0_i32 : i32, i32
  }
}

</mosaic_0001>

<bundles_post_ra>
// kernel: tpu_custom_call.1
= control target key start
LH: loop header
LB: loop body
LE: loop exit
PB: predicated region body
PF: predicated region fallthrough
CT: control target
= control target key end

     0   :  { %6 = vsyncpa [#allocation3], 0  ;;  %s102_s0 = inlined_call_operand.hbm [shape: f32[8,128], index: 0, kind: input, shape index: {}]   ;;  %s103_s1 = inlined_call_operand.hbm [shape: f32[8,128], index: 1, kind: output, shape index: {}]  }
   0x1   :  { %7 = vsyncpa [#allocation4], 0  ;;  %s84_s6 = smov [#allocation2]  }
   0x2   :  { %s14_s7 = sshll.u32 %s84_s6, 4  ;;  %s15_s7 = int_to_ptr.vmem [resolvable:$true] %s14_s7 }
   0x3   :  { %s48_s8 = scalar_lea.vmem %s15_s7, 128  ;;  %p53_p1 = scmp.lt.s32.totalorder %s15_s7, %s15_s7 }
   0x4   :  { %p49_p0 = scmp.ne.s32.totalorder %s15_s7, %s48_s8  ;;  %p54_p2 = scmp.lt.s32.totalorder %s48_s8, %s48_s8 }
   0x6   :  { %p55_p3 = por %p54_p2, %p53_p1 }
   0x8   :  { %p56_p4 = pnand %p55_p3, %p49_p0 }
   0xa   :  { %59 = shalt.err (!%p56_p4)
}
   0xb   :  { %17 = dma.hbm_to_vmem [thread:$0]  %s102_s0, 128, %s15_s7, [#allocation3]  }
   0xc   :  { %80 = dma.done.wait [#allocation3], 128  }
   0xd   :  { %81 = vsyncadd [#allocation3], 4294967168  ;;  %s85_s11 = smov [#allocation5]   ;;  %v21_v0 = vld [vmem:[#allocation2] sm:$0xff] }
   0xe   :  { %s29_s12 = sshll.u32 %s85_s11, 4  ;;  %22 = vst [vmem:[#allocation5] sm:$0xff] %v21_v0  ;;  %s30_s12 = int_to_ptr.vmem [resolvable:$true] %s29_s12 }
   0xf   :  { %s60_s13 = scalar_lea.vmem %s30_s12, 128  ;;  %p65_p6 = scmp.lt.s32.totalorder %s30_s12, %s30_s12 }
  0x10   :  { %p61_p5 = scmp.ne.s32.totalorder %s30_s12, %s60_s13  ;;  %p66_p7 = scmp.lt.s32.totalorder %s60_s13, %s60_s13 }
  0x12   :  { %p67_p8 = por %p66_p7, %p65_p6 }
  0x14   :  { %p68_p9 = pnand %p67_p8, %p61_p5 }
  0x16   :  { %71 = shalt.err (!%p68_p9)
}
  0x17   :  { %32 = dma.vmem_to_hbm [thread:$0]  %s30_s12, 128, %s103_s1, [#allocation4]  }
  0x18   :  { %82 = dma.done.wait [#allocation4], 128  }
  0x19   :  { %83 = vsyncadd [#allocation4], 4294967168 }
  0x1a   :  { %36 = vsyncpa [#allocation3], 1 }
  0x1b   :  { %37 = vsyncpa [#allocation4], 1 }

// kernel: tpu_custom_call.1
= control target key start
LH: loop header
LB: loop body
LE: loop exit
PB: predicated region body
PF: predicated region fallthrough
CT: control target
= control target key end

     0   :  { %8 = vsyncpa [#allocation3], 0  ;;  %s852_s0 = inlined_call_operand.hbm [shape: bf16[8,16], index: 0, kind: input, shape index: {}]   ;;  %s853_s1 = inlined_call_operand.hbm [shape: bf16[16,2048], index: 1, kind: input, shape index: {}]   ;;  %s854_s2 = inlined_call_operand.hbm [shape: f32[1,2048], index: 2, kind: input, shape index: {}]   ;;  %s855_s3 = inlined_call_operand.hbm [shape: bf16[8,2048], index: 3, kind: output, shape index: {}]  }
   0x1   :  { %9 = vsyncpa [#allocation6], 0 }
   0x2   :  { %10 = vsyncpa [#allocation4], 0  ;;  %s787_s12 = smov [#allocation5]  }
   0x3   :  { %s26_s13 = sshll.u32 %s787_s12, 4  ;;  %s27_s13 = int_to_ptr.vmem [resolvable:$true] %s26_s13 }
   0x4   :  { %s709_s14 = scalar_lea.vmem %s27_s13, 2048  ;;  %p714_p1 = scmp.lt.s32.totalorder %s27_s13, %s27_s13 }
   0x5   :  { %p710_p0 = scmp.ne.s32.totalorder %s27_s13, %s709_s14  ;;  %p715_p2 = scmp.lt.s32.totalorder %s709_s14, %s709_s14 }
   0x7   :  { %p716_p3 = por %p715_p2, %p714_p1 }
   0x9   :  { %p717_p4 = pnand %p716_p3, %p710_p0 }
   0xb   :  { %720 = shalt.err (!%p717_p4)
}
   0xc   :  { %s788_s15 = smov 1024   ;;  %s789_s16 = smov 64  }
   0xd   :  { %32 = dma.hbm_to_vmem [thread:$0]  %s853_s1, 2048, %s27_s13, [#allocation6], %s788_s15, %s788_s15, %s789_s16  }
   0xe   :  { %s790_s19 = smov [#allocation2]   ;;  %s791_s21 = smov [#allocation7]  }
   0xf   :  { %s17_s20 = sshll.u32 %s790_s19, 4  ;;  %s39_s22 = sshll.u32 %s791_s21, 4  ;;  %s18_s20 = int_to_ptr.vmem [resolvable:$true] %s17_s20  ;;  %s40_s22 = int_to_ptr.vmem [resolvable:$true] %s39_s22 }
  0x10   :  { %s729_s23 = scalar_lea.vmem %s18_s20, 64  ;;  %p734_p6 = scmp.lt.s32.totalorder %s18_s20, %s18_s20 }
  0x11   :  { %p730_p5 = scmp.ne.s32.totalorder %s18_s20, %s729_s23  ;;  %p735_p7 = scmp.lt.s32.totalorder %s729_s23, %s729_s23 }
  0x13   :  { %p736_p8 = por %p735_p7, %p734_p6 }
  0x15   :  { %p737_p9 = pnand %p736_p8, %p730_p5 }
  0x17   :  { %740 = shalt.err (!%p737_p9)
}
  0x18   :  { %20 = dma.hbm_to_vmem [thread:$0]  %s852_s0, 64, %s18_s20, [#allocation3]  }
  0x19   :  { %s749_s26 = scalar_lea.vmem %s40_s22, 256  ;;  %p754_p11 = scmp.lt.s32.totalorder %s40_s22, %s40_s22 }
  0x1a   :  { %p750_p10 = scmp.ne.s32.totalorder %s40_s22, %s749_s26  ;;  %p755_p12 = scmp.lt.s32.totalorder %s749_s26, %s749_s26 }
  0x1c   :  { %p756_p13 = por %p755_p12, %p754_p11 }
  0x1e   :  { %p757_p0 = pnand %p756_p13, %p750_p10 }
  0x20   :  { %760 = shalt.err (!%p757_p0)
}
  0x21   :  { %42 = dma.hbm_to_vmem [thread:$0]  %s854_s2, 256, %s40_s22, [#allocation6]  }
  0x22   :  { %781 = dma.done.wait [#allocation3], 64  }
  0x23   :  { %782 = vsyncadd [#allocation3], 4294967232 }
  0x24   :  { %783 = dma.done.wait [#allocation6], 2304  }
  0x25   :  { %784 = vsyncadd [#allocation6], 4294964992  ;;  %v792_v0 = vmov 0   ;;  %v54_v1 = vld [vmem:[#allocation5] sm:$0xff]  ;;  %v55_v3 = vld [vmem:[#allocation5 + $0x8] sm:$0xff]  ;;  %vm234_vm0 = vcmask 130048   ;;  %v74_v34 = vlaneseq }
  0x26   :  { %270 = vmatprep.mubr.bf16.mxu0 %v792_v0  ;;  %311 = vmatprep.mubr.bf16.mxu1 %v792_v0  ;;  %v62_v2 = vld [vmem:[#allocation5 + $0x40] sm:$0xff]  ;;  %v63_v5 = vld [vmem:[#allocation5 + $0x48] sm:$0xff]  ;;  %v56_v7 = vld [vmem:[#allocation5 + $0x10] sm:$0xff]  ;;  %s793_s0 = smov [#allocation8]  }
  0x27   :  { %v655_v4 = vcombine.high %v54_v1, %v62_v2  ;;  %v654_v6 = vcombine.low %v54_v1, %v62_v2  ;;  %v657_v8 = vcombine.high %v55_v3, %v63_v5  ;;  %v656_v9 = vcombine.low %v55_v3, %v63_v5  ;;  %v64_v10 = vld [vmem:[#allocation5 + $0x50] sm:$0xff]  ;;  %v57_v11 = vld [vmem:[#allocation5 + $0x18] sm:$0xff]  ;;  %v58_v15 = vld [vmem:[#allocation5 + $0x20] sm:$0xff]  ;;  %s644_s2 = sshll.u32 %s793_s0, 4  ;;  %s645_s2 = int_to_ptr.vmem [resolvable:$true] %s644_s2 }
  0x28   :  { %v65_v12 = vld [vmem:[#allocation5 + $0x58] sm:$0xff]  ;;  %v659_v13 = vcombine.high %v56_v7, %v64_v10  ;;  %v66_v16 = vld [vmem:[#allocation5 + $0x60] sm:$0xff]  ;;  %v658_v18 = vcombine.low %v56_v7, %v64_v10  ;;  %v59_v19 = vld [vmem:[#allocation5 + $0x28] sm:$0xff]  ;;  %v839_v35 = vshrl.u32 %v74_v34, 7  ;;  %s761_s28 = scalar_lea.vmem %s645_s2, 1024  ;;  %p766_p2 = scmp.lt.s32.totalorder %s645_s2, %s645_s2 }
  0x29   :  { %252 = vmatprep.subr.bf16.mxu0 %v655_v4  ;;  %v661_v14 = vcombine.high %v57_v11, %v65_v12  ;;  %293 = vmatprep.subr.bf16.mxu1 %v657_v8  ;;  %v53_v17 = vld [vmem:[#allocation2] sm:$0xf]  ;;  %v67_v20 = vld [vmem:[#allocation5 + $0x68] sm:$0xff]  ;;  %v660_v21 = vcombine.low %v57_v11, %v65_v12  ;;  %v663_v22 = vcombine.high %v58_v15, %v66_v16  ;;  %v60_v24 = vld [vmem:[#allocation5 + $0x30] sm:$0xff]  ;;  %p762_p1 = scmp.ne.s32.totalorder %s645_s2, %s761_s28  ;;  %p767_p3 = scmp.lt.s32.totalorder %s761_s28, %s761_s28 }
  0x2a   :  { %253 = vmatpush1.bf16.msra.mxu0 %v654_v6  ;;  %294 = vmatpush1.bf16.msra.mxu1 %v656_v9  ;;  %v665_v23 = vcombine.high %v59_v19, %v67_v20  ;;  %v68_v25 = vld [vmem:[#allocation5 + $0x70] sm:$0xff]  ;;  %v662_v26 = vcombine.low %v58_v15, %v66_v16  ;;  %v61_v27 = vld [vmem:[#allocation5 + $0x38] sm:$0xff]  ;;  %v664_v29 = vcombine.low %v59_v19, %v67_v20  ;;  %v76_v36 = vsub.s32 0, %v839_v35  ;;  %v70_v38 = vld [vmem:[#allocation7] sm:$0xff] }
  0x2b   :  { %334 = vmatprep.subr.bf16.mxu0 %v659_v13  ;;  %375 = vmatprep.subr.bf16.mxu1 %v661_v14  ;;  %v69_v28 = vld [vmem:[#allocation5 + $0x78] sm:$0xff]  ;;  %v667_v30 = vcombine.high %v60_v24, %v68_v25  ;;  %v666_v32 = vcombine.low %v60_v24, %v68_v25  ;;  %v80_v37 = vsub.s32 1, %v839_v35  ;;  %v84_v39 = vsub.s32 2, %v839_v35  ;;  %v71_v12 = vld [vmem:[#allocation7 + $0x8] sm:$0xff]  ;;  %p768_p4 = por %p767_p3, %p766_p2 }
  0x2c   :  { %v669_v31 = vcombine.high %v61_v27, %v69_v28  ;;  %v668_v33 = vcombine.low %v61_v27, %v69_v28  ;;  %v88_v40 = vsub.s32 3, %v839_v35  ;;  %v77_v41 = vrot.slane %v70_v38, %v76_v36 }
  0x2d   :  { %670 = vmatmul.mubr.msk.bf16.vlgmr.msra.gmra.mxu0 %vm234_vm0, %v53_v17  ;;  %671 = vmatmul.mubr.msk.bf16.vlgmr.msra.gmra.mxu1 %vm234_vm0, %v53_v17  ;;  %v81_v42 = vrot.slane %v70_v38, %v80_v37  ;;  %v85_v44 = vrot.slane %v70_v38, %v84_v39  ;;  %v92_v51 = vsub.s32 4, %v839_v35  ;;  %v96_v52 = vsub.s32 5, %v839_v35  ;;  %p769_p5 = pnand %p768_p4, %p762_p1 }
  0x2e   :  { %335 = vmatpush1.bf16.msra.mxu0 %v658_v18  ;;  %376 = vmatpush1.bf16.msra.mxu1 %v660_v21  ;;  %v89_v45 = vrot.slane %v70_v38, %v88_v40  ;;  %v100_v56 = vsub.s32 6, %v839_v35  ;;  %v104_v57 = vsub.s32 7, %v839_v35  ;;  %v109_v18 = vrot.slane %v71_v12, %v76_v36 }
  0x2f   :  { %352 = vmatprep.mubr.bf16.mxu0 %v792_v0  ;;  %393 = vmatprep.mubr.bf16.mxu1 %v792_v0  ;;  %v93_v63 = vrot.slane %v70_v38, %v92_v51  ;;  %v113_v19 = vrot.slane %v71_v12, %v80_v37  ;;  %v117_v21 = vrot.slane %v71_v12, %v84_v39 }
  0x30   :  { %416 = vmatprep.subr.bf16.mxu0 %v663_v22  ;;  %457 = vmatprep.subr.bf16.mxu1 %v665_v23  ;;  %v101_v2 = vrot.slane %v70_v38, %v100_v56  ;;  %v105_v3 = vrot.slane %v70_v38, %v104_v57  ;;  %v121_v22 = vrot.slane %v71_v12, %v88_v40 }
  0x31   :  { %v125_v36 = vrot.slane %v71_v12, %v92_v51  ;;  %v129_v37 = vrot.slane %v71_v12, %v96_v52  ;;  %v133_v39 = vrot.slane %v71_v12, %v100_v56  ;;  %v137_v40 = vrot.slane %v71_v12, %v104_v57 }
  0x35   :  { %672 = vmatmul.mubr.msk.bf16.vlgmr.msra.gmra.mxu0 %vm234_vm0, %v53_v17  ;;  %673 = vmatmul.mubr.msk.bf16.vlgmr.msra.gmra.mxu1 %vm234_vm0, %v53_v17 }
  0x36   :  { %417 = vmatpush1.bf16.msra.mxu0 %v662_v26  ;;  %458 = vmatpush1.bf16.msra.mxu1 %v664_v29 }
  0x37   :  { %434 = vmatprep.mubr.bf16.mxu0 %v792_v0  ;;  %475 = vmatprep.mubr.bf16.mxu1 %v792_v0 }
  0x38   :  { %498 = vmatprep.subr.bf16.mxu0 %v667_v30  ;;  %539 = vmatprep.subr.bf16.mxu1 %v669_v31 }
  0x3d   :  { %674 = vmatmul.mubr.msk.bf16.vlgmr.msra.gmra.mxu0 %vm234_vm0, %v53_v17  ;;  %675 = vmatmul.mubr.msk.bf16.vlgmr.msra.gmra.mxu1 %vm234_vm0, %v53_v17 }
  0x3e   :  { %499 = vmatpush1.bf16.msra.mxu0 %v666_v32  ;;  %540 = vmatpush1.bf16.msra.mxu1 %v668_v33 }
  0x3f   :  { %516 = vmatprep.mubr.bf16.mxu0 %v792_v0  ;;  %557 = vmatprep.mubr.bf16.mxu1 %v792_v0  ;;  %v97_v0 = vrot.slane %v70_v38, %v96_v52 }
  0x45   :  { %676 = vmatmul.mubr.msk.bf16.vlgmr.msra.gmra.mxu0 %vm234_vm0, %v53_v17  ;;  %677 = vmatmul.mubr.msk.bf16.vlgmr.msra.gmra.mxu1 %vm234_vm0, %v53_v17 }
  0xed   :  { %v272_v43 = vpop.f32.mrf.mxu0  ;;  %v313_v46 = vpop.f32.mrf.mxu1 }
  0xee   :  { %v273_v48 = vadd.f32 %v272_v43, %v77_v41  ;;  %v314_v53 = vadd.f32 %v313_v46, %v85_v44 }
  0xef   :  { %v274_v47 = vpop.f32.mrf.mxu0  ;;  %v315_v50 = vpop.f32.mrf.mxu1 }
  0xf0   :  { %v275_v49 = vadd.f32 %v274_v47, %v81_v42  ;;  %v316_v54 = vadd.f32 %v315_v50, %v89_v45 }
  0xf1   :  { %v276_v55 = vpop.f32.mrf.mxu0  ;;  %v317_v59 = vpop.f32.mrf.mxu1 }
  0xf2   :  { %v686_v58 = vpack.c.bf16 %v275_v49, %v273_v48  ;;  %v687_v60 = vpack.c.bf16 %v316_v54, %v314_v53 }
  0xf3   :  { %v277_v61 = vpop.f32.mrf.mxu0  ;;  %v318_v62 = vpop.f32.mrf.mxu1 }
  0xf4   :  { %630 = vst [vmem:[#allocation8] sm:$0xff] %v686_v58  ;;  %631 = vst [vmem:[#allocation8 + $0x8] sm:$0xff] %v687_v60 }
  0xf5   :  { %v354_v1 = vpop.f32.mrf.mxu0  ;;  %v395_v4 = vpop.f32.mrf.mxu1 }
  0xf6   :  { %v355_v6 = vadd.f32 %v354_v1, %v93_v63  ;;  %v396_v9 = vadd.f32 %v395_v4, %v101_v2 }
  0xf7   :  { %v356_v5 = vpop.f32.mrf.mxu0  ;;  %v397_v8 = vpop.f32.mrf.mxu1 }
  0xf8   :  { %v357_v7 = vadd.f32 %v356_v5, %v97_v0  ;;  %v398_v10 = vadd.f32 %v397_v8, %v105_v3 }
  0xf9   :  { %v358_v11 = vpop.f32.mrf.mxu0  ;;  %v399_v14 = vpop.f32.mrf.mxu1 }
  0xfa   :  { %v688_v13 = vpack.c.bf16 %v357_v7, %v355_v6  ;;  %v689_v15 = vpack.c.bf16 %v398_v10, %v396_v9 }
  0xfb   :  { %v359_v16 = vpop.f32.mrf.mxu0  ;;  %v400_v17 = vpop.f32.mrf.mxu1 }
  0xfc   :  { %632 = vst [vmem:[#allocation8 + $0x10] sm:$0xff] %v688_v13  ;;  %633 = vst [vmem:[#allocation8 + $0x18] sm:$0xff] %v689_v15 }
  0xfd   :  { %v436_v20 = vpop.f32.mrf.mxu0  ;;  %v477_v23 = vpop.f32.mrf.mxu1 }
  0xfe   :  { %v437_v25 = vadd.f32 %v436_v20, %v109_v18  ;;  %v478_v28 = vadd.f32 %v477_v23, %v117_v21 }
  0xff   :  { %v438_v24 = vpop.f32.mrf.mxu0  ;;  %v479_v27 = vpop.f32.mrf.mxu1 }
 0x100   :  { %v439_v26 = vadd.f32 %v438_v24, %v113_v19  ;;  %v480_v29 = vadd.f32 %v479_v27, %v121_v22 }
 0x101   :  { %v440_v30 = vpop.f32.mrf.mxu0  ;;  %v481_v32 = vpop.f32.mrf.mxu1 }
 0x102   :  { %v690_v31 = vpack.c.bf16 %v439_v26, %v437_v25  ;;  %v691_v33 = vpack.c.bf16 %v480_v29, %v478_v28 }
 0x103   :  { %v441_v34 = vpop.f32.mrf.mxu0  ;;  %v482_v35 = vpop.f32.mrf.mxu1 }
 0x104   :  { %634 = vst [vmem:[#allocation8 + $0x20] sm:$0xff] %v690_v31  ;;  %635 = vst [vmem:[#allocation8 + $0x28] sm:$0xff] %v691_v33 }
 0x105   :  { %v518_v38 = vpop.f32.mrf.mxu0  ;;  %v559_v41 = vpop.f32.mrf.mxu1 }
 0x106   :  { %v519_v43 = vadd.f32 %v518_v38, %v125_v36  ;;  %v560_v46 = vadd.f32 %v559_v41, %v133_v39 }
 0x107   :  { %v520_v42 = vpop.f32.mrf.mxu0  ;;  %v561_v45 = vpop.f32.mrf.mxu1 }
 0x108   :  { %v521_v44 = vadd.f32 %v520_v42, %v129_v37  ;;  %v562_v47 = vadd.f32 %v561_v45, %v137_v40 }
 0x109   :  { %v522_v48 = vpop.f32.mrf.mxu0  ;;  %v563_v50 = vpop.f32.mrf.mxu1 }
 0x10a   :  { %v692_v49 = vpack.c.bf16 %v521_v44, %v519_v43  ;;  %v693_v53 = vpack.c.bf16 %v562_v47, %v560_v46 }
 0x10b   :  { %v523_v54 = vpop.f32.mrf.mxu0  ;;  %v564_v51 = vpop.f32.mrf.mxu1 }
 0x10c   :  { %636 = vst [vmem:[#allocation8 + $0x30] sm:$0xff] %v692_v49  ;;  %637 = vst [vmem:[#allocation8 + $0x38] sm:$0xff] %v693_v53 }
 0x10d   :  { %772 = shalt.err (!%p769_p5)
}
 0x10e   :  { %647 = dma.vmem_to_hbm [thread:$0]  %s645_s2, 1024, %s855_s3, [#allocation4]  }
 0x10f   :  { %785 = dma.done.wait [#allocation4], 1024  }
 0x110   :  { %786 = vsyncadd [#allocation4], 4294966272 }
 0x111   :  { %651 = vsyncpa [#allocation3], 1 }
 0x112   :  { %652 = vsyncpa [#allocation6], 1 }
 0x113   :  { %653 = vsyncpa [#allocation4], 1 }

</bundles_post_ra>
